<compile_context>
chip_gen: v7x
topology: tpu7x:2x2x1
jax: 0.10.0
libtpu: 0.0.40
codegen_flags: <defaults>
</compile_context>

<pallas_src>
import math

import jax
import jax.numpy as jnp
from jax.experimental import pallas as pl
from jax.experimental.pallas import tpu as pltpu

HIDDEN = 128  # feature_layer output size (fixed in the module)


# ------------------------------- kernel -------------------------------
def stock_u_kernel(x_ref, w1_ref, w2_ref, aux_ref, q_ref):
    """One batch tile: x (bm, in_dim) -> q written as a lane-dense (1, bm) row."""
    b1 = aux_ref[0:1, :HIDDEN]    # (1, 128)       f32
    b2 = aux_ref[1:2, :]          # (1, pad_atom)  f32 (padded lanes = -1e9)
    sup = aux_ref[2:3, :]         # (1, pad_atom)  f32 (padded lanes = 0)

    # ---- NoisyLinear #1 (effective weights precombined in the wrapper) ----
    feat = jnp.dot(x_ref[...], w1_ref[...],
                   preferred_element_type=jnp.float32) + b1

    # nn.Dropout() is identity at inference (eval mode).
    # TODO(synk): training-mode dropout (p=0.5 Bernoulli mask) not emitted here.
    feat = jnp.maximum(feat, 0.0)                                  # ReLU (f32)

    # ---- NoisyLinear #2 (atom axis lane-padded to a multiple of 128) ----
    value = jnp.dot(feat.astype(jnp.bfloat16), w2_ref[...],
                    preferred_element_type=jnp.float32) + b2

    # softmax over atoms (f32, v5e-safe) + clamp(min=0.001); padded lanes have
    # bias -1e9 -> exp underflows to 0, support 0 -> no contribution to q.
    m = jnp.max(value, axis=-1, keepdims=True)
    e = jnp.exp(value - m)
    denom = jnp.sum(e, axis=-1, keepdims=True)
    dist = e * pl.reciprocal(denom, approx=False)   # exact (review note)
    dist = jnp.maximum(dist, 0.001)

    # q = sum(dist * support) over atoms, stored LANE-DENSE as (1, bm).
    # Use a well-supported full 2-D XLU transpose (XLU has slack here) and a
    # sublane reduction instead of a masked (bm, 1) column store.
    wq = (dist * sup).T                                      # (pad_atom, bm)
    q_ref[...] = jnp.sum(wq, axis=0, keepdims=True)          # (1, bm)


# ------------------------------- wrapper -------------------------------
def _round_up(x: int, m: int) -> int:
    return ((x + m - 1) // m) * m


def _pick_tiling(B: int):
    """Return (bm, B_pad).  bm <= 2048; >=2 tiles when B is large (v7x TCs)."""
    BM_CAP = 2048  # live tensors at bm=2048 stay < ~4 MiB  (x 64 KiB bf16,
    #               feat/value ~1 MiB f32 each) — safe on v5e/v6e/v7x.
    if B <= 256:
        return B, B                      # single tile (blocks = full dims)
    n_tiles = max(2, pl.cdiv(B, BM_CAP))  # >= 2 so v7x megacore gets work
    bm = min(BM_CAP, _round_up(pl.cdiv(B, n_tiles), 256))
    return bm, _round_up(B, bm)


def stock_u_forward(x, params, support):
    """x: (B, in_dim) f32.  Returns q: (B, 1) f32."""
    B, in_dim = x.shape
    atom = int(support.shape[0])
    pad_atom = max(128, _round_up(atom, 128))

    (w1m, w1s, w1e, b1m, b1s, b1e,
     w2m, w2s, w2e, b2m, b2s, b2e) = params

    # Fold the factorized noise ONCE on the XLA side (weights are tiny);
    # pass 4 effective arrays.  Matmul operands bf16, biases/support f32.
    w1 = (w1m + w1s * w1e).T.astype(jnp.bfloat16)              # (in, 128)
    b1 = (b1m + b1s * b1e).astype(jnp.float32)                 # (128,)
    w2 = (w2m + w2s * w2e).T.astype(jnp.bfloat16)              # (128, atom)
    b2 = (b2m + b2s * b2e).astype(jnp.float32)                 # (atom,)
    sup = support.astype(jnp.float32)                          # (atom,)

    # Lane-pad atom axis to a multiple of 128 and stack the three small f32
    # row-vectors into ONE operand (fewer DMA issues before first compute).
    if pad_atom != atom:
        w2 = jnp.pad(w2, ((0, 0), (0, pad_atom - atom)))

    def pad_row(v, fill=0.0):
        return jnp.pad(v, (0, pad_atom - v.shape[0]), constant_values=fill)

    aux = jnp.stack([pad_row(b1),            # row 0: b1 (first HIDDEN lanes)
                     pad_row(b2, -1e9),      # row 1: b2 (pad -> softmax ~0)
                     pad_row(sup)])          # row 2: support (pad -> 0)

    # Batch tiling: pad B to a multiple of bm (zero rows, sliced off below).
    bm, B_pad = _pick_tiling(B)
    if B_pad != B:
        x = jnp.pad(x, ((0, B_pad - B), (0, 0)))
    x_bf = x.astype(jnp.bfloat16)

    grid = (B_pad // bm,)

    def const(shape):
        return pl.BlockSpec(shape, lambda i: (0, 0))

    in_specs = [
        pl.BlockSpec((bm, in_dim), lambda i: (i, 0)),   # x: tiled over batch
        const((in_dim, HIDDEN)),                        # w1 (VMEM-resident)
        const((HIDDEN, pad_atom)),                      # w2 (VMEM-resident)
        const((3, pad_atom)),                           # [b1; b2; support]
    ]
    # Lane-dense output: q is a (1, B_pad) row, tiled (1, bm) over the grid.
    out_spec = pl.BlockSpec((1, bm), lambda i: (0, i))

    cost = pl.CostEstimate(
        flops=2 * B_pad * (in_dim * HIDDEN + HIDDEN * pad_atom),
        transcendentals=B_pad * (pad_atom + 1),
        bytes_accessed=(x_bf.size * 2 + w1.size * 2 + w2.size * 2
                        + aux.size * 4 + B_pad * 4),
    )

    out = pl.pallas_call(
        stock_u_kernel,
        out_shape=jax.ShapeDtypeStruct((1, B_pad), jnp.float32),
        grid_spec=pltpu.PrefetchScalarGridSpec(
            num_scalar_prefetch=0,
            grid=grid,
            in_specs=in_specs,
            out_specs=out_spec,
        ),
        compiler_params=pltpu.CompilerParams(
            dimension_semantics=("parallel",),          # megacore-shardable
            vmem_limit_bytes=32 * 1024 * 1024,          # v5e guard (16 MiB default)
        ),
        cost_estimate=cost,
    )(x_bf, w1, w2, aux)

    # (1, B_pad) -> (B, 1): reshape is a metadata op, slice drops padded rows.
    return out.reshape(B_pad, 1)[:B]


# ---------------- deterministic parameter construction ----------------
def scale_noise(key, size):
    x = jax.random.normal(key, (size,), dtype=jnp.float32)
    return jnp.sign(x) * jnp.sqrt(jnp.abs(x))


def make_noisy_linear_params(key, in_features, out_features, std_init=0.5):
    k_wm, k_bm, k_ein, k_eout = jax.random.split(key, 4)
    mu_range = 1.0 / math.sqrt(in_features)
    weight_mu = jax.random.uniform(
        k_wm, (out_features, in_features), jnp.float32, -mu_range, mu_range)
    weight_sigma = jnp.full((out_features, in_features),
                            std_init / math.sqrt(in_features), jnp.float32)
    bias_mu = jax.random.uniform(
        k_bm, (out_features,), jnp.float32, -mu_range, mu_range)
    bias_sigma = jnp.full((out_features,),
                          std_init / math.sqrt(out_features), jnp.float32)
    eps_in = scale_noise(k_ein, in_features)
    eps_out = scale_noise(k_eout, out_features)
    weight_epsilon = jnp.outer(eps_out, eps_in)
    bias_epsilon = eps_out
    return (weight_mu, weight_sigma, weight_epsilon,
            bias_mu, bias_sigma, bias_epsilon)


# ------------------------------- references -------------------------------
def reference_forward(x, params, support):
    """Exact f32 semantics of the PyTorch module (eval-mode dropout)."""
    (w1m, w1s, w1e, b1m, b1s, b1e,
     w2m, w2s, w2e, b2m, b2s, b2e) = params
    w1 = w1m + w1s * w1e
    b1 = b1m + b1s * b1e
    w2 = w2m + w2s * w2e
    b2 = b2m + b2s * b2e
    feat = jnp.maximum(x @ w1.T + b1, 0.0)
    value = feat @ w2.T + b2
    dist = jnp.maximum(jax.nn.softmax(value, axis=-1), 0.001)
    return jnp.sum(dist * support[None, :], axis=-1, keepdims=True)


def reference_forward_bf16(x, params, support):
    """Emulates the kernel's mixed precision (bf16 MXU inputs, f32 accum)."""
    (w1m, w1s, w1e, b1m, b1s, b1e,
     w2m, w2s, w2e, b2m, b2s, b2e) = params
    w1 = (w1m + w1s * w1e).T.astype(jnp.bfloat16)
    b1 = (b1m + b1s * b1e)
    w2 = (w2m + w2s * w2e).T.astype(jnp.bfloat16)
    b2 = (b2m + b2s * b2e)
    feat = jnp.dot(x.astype(jnp.bfloat16), w1,
                   preferred_element_type=jnp.float32) + b1
    feat = jnp.maximum(feat, 0.0)
    value = jnp.dot(feat.astype(jnp.bfloat16), w2,
                    preferred_element_type=jnp.float32) + b2
    dist = jnp.maximum(jax.nn.softmax(value, axis=-1), 0.001)
    return jnp.sum(dist * support[None, :], axis=-1, keepdims=True)


if __name__ == "__main__":
    key = jax.random.PRNGKey(0)
    k_x, k_l1, k_l2 = jax.random.split(key, 3)

    in_dim, atom_size = 16, 32
    support = jnp.linspace(-10.0, 10.0, atom_size, dtype=jnp.float32)

    p1 = make_noisy_linear_params(k_l1, in_dim, HIDDEN)
    p2 = make_noisy_linear_params(k_l2, HIDDEN, atom_size)
    params = p1 + p2

    # B=512: two clean 256-row tiles (grid=(2,), both v7x TCs busy).
    # B=300: exercises the pad-to-multiple-of-bm path (padded rows sliced off).
    for B in (512, 300):
        x = jax.random.normal(k_x, (B, in_dim), dtype=jnp.float32)
        q = jax.block_until_ready(stock_u_forward(x, params, support))
        assert q.shape == (B, 1), q.shape

        # Tight check vs a reference mirroring the kernel's bf16/f32 numerics.
        q_bf = reference_forward_bf16(x, params, support)
        assert jnp.allclose(q, q_bf, atol=5e-3, rtol=5e-3), \
            (B, float(jnp.max(jnp.abs(q - q_bf))))
        # Loose check vs exact f32 module semantics (bf16 MXU inputs dominate).
        q_fp = reference_forward(x, params, support)
        assert jnp.allclose(q, q_fp, atol=1e-1, rtol=5e-2), \
            (B, float(jnp.max(jnp.abs(q - q_fp))))

    print("KERNEL_OK")
</pallas_src>

<mosaic_0001>
module attributes {stable_mosaic.version = 11 : i64} {
  func.func @stock_u_kernel(%arg0: i32, %arg1: memref<256x16xbf16, #tpu.memory_space<vmem>>, %arg2: memref<16x128xbf16, #tpu.memory_space<vmem>>, %arg3: memref<128x128xbf16, #tpu.memory_space<vmem>>, %arg4: memref<3x128xf32, #tpu.memory_space<vmem>>, %arg5: memref<1x256xf32, #tpu.memory_space<vmem>>) attributes {dimension_semantics = [#tpu.dimension_semantics<parallel>], iteration_bounds = array<i64: 2>, scalar_prefetch = 0 : i64, scratch_operands = 0 : i64, tpu.core_type = #tpu.core_type<tc>, window_params = [{transform_indices = @transform_0, window_bounds = array<i64: 256, 16>}, {pipeline_mode = #tpu.pipeline_mode<synchronous>, transform_indices = @transform_1, window_bounds = array<i64: 16, 128>}, {pipeline_mode = #tpu.pipeline_mode<synchronous>, transform_indices = @transform_2, window_bounds = array<i64: 128, 128>}, {pipeline_mode = #tpu.pipeline_mode<synchronous>, transform_indices = @transform_3, window_bounds = array<i64: 3, 128>}, {transform_indices = @transform_4, window_bounds = array<i64: 1, 256>}]} {
    %c0 = arith.constant 0 : index
    %c0_0 = arith.constant 0 : index
    %0 = vector.load %arg4[%c0, %c0_0] : memref<3x128xf32, #tpu.memory_space<vmem>>, vector<1x128xf32>
    %c1 = arith.constant 1 : index
    %c0_1 = arith.constant 0 : index
    %1 = vector.load %arg4[%c1, %c0_1] : memref<3x128xf32, #tpu.memory_space<vmem>>, vector<1x128xf32>
    %c2 = arith.constant 2 : index
    %c0_2 = arith.constant 0 : index
    %2 = vector.load %arg4[%c2, %c0_2] : memref<3x128xf32, #tpu.memory_space<vmem>>, vector<1x128xf32>
    %c0_3 = arith.constant 0 : index
    %c0_4 = arith.constant 0 : index
    %3 = vector.load %arg1[%c0_3, %c0_4] : memref<256x16xbf16, #tpu.memory_space<vmem>>, vector<256x16xbf16>
    %c0_5 = arith.constant 0 : index
    %c0_6 = arith.constant 0 : index
    %4 = vector.load %arg2[%c0_5, %c0_6] : memref<16x128xbf16, #tpu.memory_space<vmem>>, vector<16x128xbf16>
    %cst = arith.constant dense<0.000000e+00> : vector<256x128xf32>
    %5 = tpu.matmul %3, %4, %cst {dimension_numbers = #tpu.dot_dimension_numbers<[1], [0], [0], [1], [0, 0, 1, 1], [], []>} : vector<256x16xbf16>, vector<16x128xbf16>, vector<256x128xf32> -> vector<256x128xf32>
    %6 = vector.broadcast %0 : vector<1x128xf32> to vector<256x128xf32>
    %7 = arith.addf %5, %6 : vector<256x128xf32>
    %cst_7 = arith.constant 0.000000e+00 : f32
    %8 = vector.broadcast %cst_7 : f32 to vector<256x128xf32>
    %9 = arith.maximumf %7, %8 : vector<256x128xf32>
    %10 = arith.truncf %9 : vector<256x128xf32> to vector<256x128xbf16>
    %c0_8 = arith.constant 0 : index
    %c0_9 = arith.constant 0 : index
    %11 = vector.load %arg3[%c0_8, %c0_9] : memref<128x128xbf16, #tpu.memory_space<vmem>>, vector<128x128xbf16>
    %cst_10 = arith.constant dense<0.000000e+00> : vector<256x128xf32>
    %12 = tpu.matmul %10, %11, %cst_10 {dimension_numbers = #tpu.dot_dimension_numbers<[1], [0], [0], [1], [0, 0, 1, 1], [], []>} : vector<256x128xbf16>, vector<128x128xbf16>, vector<256x128xf32> -> vector<256x128xf32>
    %13 = vector.broadcast %1 : vector<1x128xf32> to vector<256x128xf32>
    %14 = arith.addf %12, %13 : vector<256x128xf32>
    %cst_11 = arith.constant dense<0xFF800000> : vector<256xf32>
    %15 = vector.multi_reduction <maximumf>, %14, %cst_11 [1] : vector<256x128xf32> to vector<256xf32>
    %16 = vector.shape_cast %15 : vector<256xf32> to vector<256x1xf32>
    %17 = vector.broadcast %16 : vector<256x1xf32> to vector<256x128xf32>
    %18 = arith.subf %14, %17 : vector<256x128xf32>
    %19 = math.exp %18 : vector<256x128xf32>
    %cst_12 = arith.constant dense<0.000000e+00> : vector<256xf32>
    %20 = vector.multi_reduction <add>, %19, %cst_12 [1] : vector<256x128xf32> to vector<256xf32>
    %21 = vector.shape_cast %20 : vector<256xf32> to vector<256x1xf32>
    %22 = tpu.reciprocal %21 : vector<256x1xf32> -> vector<256x1xf32>
    %23 = vector.broadcast %22 : vector<256x1xf32> to vector<256x128xf32>
    %24 = arith.mulf %19, %23 : vector<256x128xf32>
    %cst_13 = arith.constant 1.000000e-03 : f32
    %25 = vector.broadcast %cst_13 : f32 to vector<256x128xf32>
    %26 = arith.maximumf %24, %25 : vector<256x128xf32>
    %27 = vector.broadcast %2 : vector<1x128xf32> to vector<256x128xf32>
    %28 = arith.mulf %26, %27 : vector<256x128xf32>
    %29 = tpu.transpose %28, [1, 0] : vector<256x128xf32> -> vector<128x256xf32>
    %cst_14 = arith.constant dense<0.000000e+00> : vector<256xf32>
    %30 = vector.multi_reduction <add>, %29, %cst_14 [0] : vector<128x256xf32> to vector<256xf32>
    %31 = vector.shape_cast %30 : vector<256xf32> to vector<1x256xf32>
    %c0_15 = arith.constant 0 : index
    %c0_16 = arith.constant 0 : index
    %32 = vector.load %arg5[%c0_15, %c0_16] : memref<1x256xf32, #tpu.memory_space<vmem>>, vector<1x256xf32>
    tpu.vector_store %arg5[%c0_15, %c0_16], %31 {strides = array<i32>} : memref<1x256xf32, #tpu.memory_space<vmem>>, vector<1x256xf32>,
    return
  }
  func.func @transform_0(%arg0: i32) -> (i32, i32) {
    %c0_i32 = arith.constant 0 : i32
    %c0_i32_0 = arith.constant 0 : i32
    return %arg0, %c0_i32 : i32, i32
  }
  func.func @transform_1(%arg0: i32) -> (i32, i32) {
    %c0_i32 = arith.constant 0 : i32
    %c0_i32_0 = arith.constant 0 : i32
    %c0_i32_1 = arith.constant 0 : i32
    return %c0_i32, %c0_i32_0 : i32, i32
  }
  func.func @transform_2(%arg0: i32) -> (i32, i32) {
    %c0_i32 = arith.constant 0 : i32
    %c0_i32_0 = arith.constant 0 : i32
    %c0_i32_1 = arith.constant 0 : i32
    return %c0_i32, %c0_i32_0 : i32, i32
  }
  func.func @transform_3(%arg0: i32) -> (i32, i32) {
    %c0_i32 = arith.constant 0 : i32
    %c0_i32_0 = arith.constant 0 : i32
    %c0_i32_1 = arith.constant 0 : i32
    return %c0_i32, %c0_i32_0 : i32, i32
  }
  func.func @transform_4(%arg0: i32) -> (i32, i32) {
    %c0_i32 = arith.constant 0 : i32
    %c0_i32_0 = arith.constant 0 : i32
    return %c0_i32, %arg0 : i32, i32
  }
}

</mosaic_0001>

<bundles_post_ra>
// kernel: tpu_custom_call.1
= control target key start
LH: loop header
LB: loop body
LE: loop exit
PB: predicated region body
PF: predicated region fallthrough
CT: control target
= control target key end

     0   :  { %9 = vsyncpa [#allocation3], 0  ;;  %s2380_s0 = inlined_call_operand.vmem [shape: bf16[512,16], index: 0, kind: input, shape index: {}]   ;;  %s2381_s1 = inlined_call_operand.vmem [shape: bf16[16,128], index: 1, kind: input, shape index: {}]   ;;  %s2382_s2 = inlined_call_operand.vmem [shape: bf16[128,128], index: 2, kind: input, shape index: {}]   ;;  %s2383_s3 = inlined_call_operand.vmem [shape: f32[3,128], index: 3, kind: input, shape index: {}]   ;;  %s2384_s4 = inlined_call_operand.hbm [shape: f32[1,512], index: 4, kind: output, shape index: {}]  }
   0x1   :  { %11 = vsyncpa [#allocation3 + $0x1], 0  ;;  %s1853_s15 = smov 0   ;;  %s1855_s16 = smov 0  }
   0x2   :  { %s1857_s17 = smov 0   ;;  %s1859_s18 = smov 0  }
   0x3 LB: > { %s1372_s19 = sadd.s32 4294967295, %s1824_s18   ;;  %s1373_s20 = sadd.s32 4294967294, %s1824_s18   ;;  %s1824_s18 = sphi %s1859_s18, %s2390_s18   ;;  %s1820_s17 = sphi %s1857_s17, %s2389_s17   ;;  %s1816_s16 = sphi %s1855_s16, %s2388_s16   ;;  %s1812_s15 = sphi %s1853_s15, %s2387_s15  }
   0x4   : > { %s1876_s21 = sadd.s32 1, %s1824_s18   ;;  %s113_s22 = sadd.s32 1, %s1820_s17 }
   0x5   : > { %s110_s23 = ssub.s32 %s1824_s18, %s1876_s21  ;;  %p123_p0 = scmp.ne.s32.totalorder %s1820_s17, %s1816_s16 }
   0x6   : > { %p111_p1 = scmp.eq.s32.totalorder %s110_s23, 0  ;;  %p124_p2 = scmp.eq.s32.totalorder %s1372_s19, 1 }
   0x7   : > { %p129_p3 = scmp.ne.s32.totalorder %s1816_s16, %s1812_s15  ;;  %p130_p4 = scmp.eq.s32.totalorder %s1373_s20, 1 }
   0x8   : > { %s1886_s24 = scalar_select %p111_p1, %s1820_s17, %s113_s22  }
   0x9   : > { %p1888_p5 = por %p124_p2, %p123_p0  ;;  %p1892_p6 = por %p130_p4, %p129_p3 }
   0xa   : > { %p1376_p7 = scmp.ge.s32.totalorder %s1824_s18, 1  ;;  %p166_p8 = scmp.lt.s32.totalorder %s1824_s18, 3 }
   0xc   : > { %p167_p9 = pnand %p1376_p7, %p166_p8 }
   0xd   : > { %v1609_v0 = vld [vmem:[%s2381_s1] sm:$0xff] (!%p167_p9)   ;;  %s1901_s29 = sshll.u32 (!%p167_p9), %s1372_s19, 5  ;;  %v1627_v2 = vld [vmem:[%s2382_s2 + $0x8] sm:$0xff] (!%p167_p9)   ;;  %vm327_vm0 = vcmask (!%p167_p9), 130048   ;;  %v1628_v3 = vld [vmem:[%s2382_s2 + $0x10] sm:$0xff] (!%p167_p9)   ;;  %s189_s14 = sand.u32 (!%p167_p9), 1, %s1816_s16  }
   0xe   : > { %170 = sbr.rel (%p167_p9) target bundleno = 1042 (0x412), region = 36  ;;  %p193_p10 = scmp.lt.s32.totalorder (!%p167_p9), %s1901_s29, 63  ;;  %1471 = vmatprep.subr.bf16.mxu0 (!%p167_p9), %v1609_v0  ;;  %v1626_v1 = vld [vmem:[%s2382_s2] sm:$0xff] (!%p167_p9)   ;;  %v1629_v7 = vld [vmem:[%s2382_s2 + $0x18] sm:$0xff] (!%p167_p9)   ;;  %v1631_v13 = vld [vmem:[%s2382_s2 + $0x28] sm:$0xff] (!%p167_p9)  }
   0xf   : > { %1472 = vmatpush3.bf16.msra.mxu0 (!%p167_p9), %v1609_v0  ;;  %1553 = vmatprep.subr.bf16.mxu1 (!%p167_p9), %v1626_v1  ;;  %v1630_v10 = vld [vmem:[%s2382_s2 + $0x20] sm:$0xff] (!%p167_p9)   ;;  %v1632_v23 = vld [vmem:[%s2382_s2 + $0x30] sm:$0xff] (!%p167_p9)   ;;  %v1633_v24 = vld [vmem:[%s2382_s2 + $0x38] sm:$0xff] (!%p167_p9)   ;;  %s1377_s19 = sshll.u32 (!%p167_p9), %s189_s14, 1  ;;  %s2338_s28 = scalar_lea.hbm (!%p167_p9), %s2384_s4, %s1901_s29 }
  0x10   : > { %1505 = vmatprep.subr.bf16.mxu0 (!%p167_p9), %v1626_v1  ;;  %1561 = vmatpush3.bf16.msra.mxu1 (!%p167_p9), %v1626_v1  ;;  %v1969_v25 = vld [vmem:[%s2383_s3] ss:$0 sm:$0xff] (!%p167_p9)  ;;  %s191_s20 = scalar_lea.vmem (!%p167_p9), [#allocation2], %s1377_s19  ;;  %s1300_s30 = scalar_lea.sflag (!%p167_p9), [#allocation3], %s189_s14 }
  0x11   : > { %1554 = vmatprep.subr.bf16.mxu1 (!%p167_p9), %v1627_v2  ;;  %s1314_s22 = sshll.u32 (!%p167_p9), %s191_s20, 4  ;;  %s2340_s22 = int_to_ptr.vmem [resolvable:$true] %s1314_s22 }
  0x12   : > { %s1762_s5 = scalar_lea.vmem (!%p167_p9), %s2340_s22, 32 }
  0x13   : > { %p1763_p11 = scmp.ne.s32.totalorder (!%p167_p9), %s2340_s22, %s1762_s5 }
  0x14   : > { %1562 = vmatpush3.bf16.msra.mxu1 (!%p167_p9), %v1627_v2 }
  0x15   : > { %s194_s6 = scalar_select %p193_p10, %s1901_s29, 63  ;;  %1555 = vmatprep.subr.bf16.mxu1 %v1628_v3 }
  0x16   : > { %p1764_p12 = pnand %p1763_p11, %p1888_p5 }
  0x17   : > { %s1379_s9 = sshll.u32 %s194_s6, 2  ;;  %s1827_s6 = smov [#allocation2]  }
  0x18   : > { %s1914_s12 = scalar_lea.vmem %s2380_s0, %s1379_s9  ;;  %1563 = vmatpush3.bf16.msra.mxu1 %v1628_v3  ;;  %p1765_p13 = pneg %p1764_p12 }
  0x19   : > { %v1610_v4 = vld [vmem:[%s1914_s12] sm:$0xff]   ;;  %v1611_v5 = vld [vmem:[%s1914_s12 + $0x8] sm:$0xff]   ;;  %v1612_v6 = vld [vmem:[%s1914_s12 + $0x10] sm:$0xff]   ;;  %1556 = vmatprep.subr.bf16.mxu1 %v1629_v7  ;;  %s1766_s7 = sshll.u32 %s1827_s6, 4  ;;  %s1767_s7 = int_to_ptr.vmem [resolvable:$false] %s1766_s7 }
  0x1a   : > { %1473 = vmatprep.mubr.msk.bf16.mxu0 %vm327_vm0, %v1610_v4  ;;  %v1613_v8 = vld [vmem:[%s1914_s12 + $0x18] sm:$0xff]   ;;  %v1614_v9 = vld [vmem:[%s1914_s12 + $0x20] sm:$0xff]   ;;  %v1615_v11 = vld [vmem:[%s1914_s12 + $0x28] sm:$0xff]   ;;  %s1768_s8 = scalar_lea.vmem %s1767_s7, 64  ;;  %p1769_p0 = scmp.lt.s32.totalorder %s2340_s22, %s1767_s7 }
  0x1b   : > { %1474 = vmatmul.mubr.msk.bf16.vlgmr.msra.gmra.mrb[0].mxu0 %vm327_vm0, %v1611_v5  ;;  %v1616_v12 = vld [vmem:[%s1914_s12 + $0x30] sm:$0xff]   ;;  %v1617_v14 = vld [vmem:[%s1914_s12 + $0x38] sm:$0xff]   ;;  %v1618_v15 = vld [vmem:[%s1914_s12 + $0x40] sm:$0xff]   ;;  %p1770_p1 = scmp.lt.s32.totalorder %s1768_s8, %s1762_s5 }
  0x1c   : > { %1477 = vmatprep.mubr.msk.bf16.mxu0 %vm327_vm0, %v1612_v6  ;;  %1506 = vmatpush3.bf16.msra.mxu0 %v1626_v1  ;;  %v1619_v16 = vld [vmem:[%s1914_s12 + $0x48] sm:$0xff]   ;;  %v1620_v17 = vld [vmem:[%s1914_s12 + $0x50] sm:$0xff]   ;;  %v1621_v18 = vld [vmem:[%s1914_s12 + $0x58] sm:$0xff]  }
  0x1d   : > { %1507 = vmatprep.subr.bf16.mxu0 %v1627_v2  ;;  %1564 = vmatpush3.bf16.msra.mxu1 %v1629_v7  ;;  %v1622_v19 = vld [vmem:[%s1914_s12 + $0x60] sm:$0xff]   ;;  %v1623_v20 = vld [vmem:[%s1914_s12 + $0x68] sm:$0xff]   ;;  %v1624_v21 = vld [vmem:[%s1914_s12 + $0x70] sm:$0xff]   ;;  %p1771_p2 = por %p1770_p1, %p1769_p0 }
  0x1e   : > { %1557 = vmatprep.subr.bf16.mxu1 %v1630_v10  ;;  %v1625_v22 = vld [vmem:[%s1914_s12 + $0x78] sm:$0xff]  }
  0x1f   : > { %p1772_p3 = pnand %p1771_p2, %p1765_p13 }
  0x20   : > { %1508 = vmatpush3.bf16.msra.mxu0 %v1627_v2 }
  0x21   : > { %1509 = vmatprep.subr.bf16.mxu0 %v1628_v3  ;;  %1565 = vmatpush3.bf16.msra.mxu1 %v1630_v10 }
  0x22   : > { %1558 = vmatprep.subr.bf16.mxu1 %v1631_v13 }
  0x23   : > { %1478 = vmatmul.mubr.msk.bf16.gmra.mrb[4].mxu0 %vm327_vm0, %v1613_v8 }
  0x24   : > { %1481 = vmatprep.mubr.msk.bf16.mxu0 %vm327_vm0, %v1614_v9  ;;  %1510 = vmatpush3.bf16.msra.mxu0 %v1628_v3 }
  0x25   : > { %1511 = vmatprep.subr.bf16.mxu0 %v1629_v7  ;;  %1566 = vmatpush3.bf16.msra.mxu1 %v1631_v13 }
  0x26   : > { %1559 = vmatprep.subr.bf16.mxu1 %v1632_v23 }
  0x28   : > { %1512 = vmatpush3.bf16.msra.mxu0 %v1629_v7 }
  0x29   : > { %1513 = vmatprep.subr.bf16.mxu0 %v1630_v10  ;;  %1567 = vmatpush3.bf16.msra.mxu1 %v1632_v23 }
  0x2a   : > { %1560 = vmatprep.subr.bf16.mxu1 %v1633_v24 }
  0x2b   : > { %1482 = vmatmul.mubr.msk.bf16.gmra.mrb[8].mxu0 %vm327_vm0, %v1615_v11 }
  0x2c   : > { %1485 = vmatprep.mubr.msk.bf16.mxu0 %vm327_vm0, %v1616_v12  ;;  %1514 = vmatpush3.bf16.msra.mxu0 %v1630_v10 }
  0x2d   : > { %1515 = vmatprep.subr.bf16.mxu0 %v1631_v13  ;;  %1568 = vmatpush3.bf16.msra.mxu1 %v1633_v24 }
  0x30   : > { %1516 = vmatpush3.bf16.msra.mxu0 %v1631_v13 }
  0x31   : > { %1517 = vmatprep.subr.bf16.mxu0 %v1632_v23 }
  0x33   : > { %1486 = vmatmul.mubr.msk.bf16.gmra.mrb[12].mxu0 %vm327_vm0, %v1617_v14 }
  0x34   : > { %1489 = vmatprep.mubr.msk.bf16.mxu0 %vm327_vm0, %v1618_v15  ;;  %1518 = vmatpush3.bf16.msra.mxu0 %v1632_v23 }
  0x35   : > { %1519 = vmatprep.subr.bf16.mxu0 %v1633_v24 }
  0x38   : > { %1520 = vmatpush3.bf16.msra.mxu0 %v1633_v24 }
  0x3b   : > { %1490 = vmatmul.mubr.msk.bf16.gmra.mrb[16].mxu0 %vm327_vm0, %v1619_v16 }
  0x3c   : > { %1493 = vmatprep.mubr.msk.bf16.mxu0 %vm327_vm0, %v1620_v17 }
  0x43   : > { %1494 = vmatmul.mubr.msk.bf16.gmra.mrb[20].mxu0 %vm327_vm0, %v1621_v18 }
  0x44   : > { %1497 = vmatprep.mubr.msk.bf16.mxu0 %vm327_vm0, %v1622_v19 }
  0x4b   : > { %1498 = vmatmul.mubr.msk.bf16.gmra.mrb[24].mxu0 %vm327_vm0, %v1623_v20 }
  0x4c   : > { %1501 = vmatprep.mubr.msk.bf16.mxu0 %vm327_vm0, %v1624_v21 }
  0x53   : > { %1502 = vmatmul.mubr.msk.bf16.gmra.mrb[28].mxu0 %vm327_vm0, %v1625_v22 }
  0xee   : > { %v1475_v26 = vpop.f32.mrb[0].mxu0 }
  0xef   : > { %v419_v27 = vadd.f32 %v1475_v26, %v1969_v25  ;;  %v410_v28 = vpop.f32.mrb[1].mxu0 }
  0xf0   : > { %v411_v29 = vadd.f32 %v1969_v25, %v410_v28  ;;  %v1476_v30 = vpop.f32.mrb[2].mxu0 }
  0xf1   : > { %v422_v31 = vadd.f32 %v1476_v30, %v1969_v25  ;;  %v413_v32 = vpop.f32.mrb[3].mxu0  ;;  %v539_v34 = vmax.f32 %v419_v27, 0.0 }
  0xf2   : > { %v414_v33 = vadd.f32 %v1969_v25, %v413_v32  ;;  %v537_v36 = vmax.f32 %v411_v29, 0.0 }
  0xf3   : > { %v540_v35 = vmax.f32 %v422_v31, 0.0 }
  0xf4   : > { %v538_v37 = vmax.f32 %v414_v33, 0.0 }
  0xf5   : > { %v570_v38 = vpack.c.bf16 %v540_v35, %v539_v34 }
  0xf6   : > { %v569_v39 = vpack.c.bf16 %v538_v37, %v537_v36  ;;  %v1479_v40 = vpop.f32.mrb[4].mxu0 }
  0xf7   : > { %v435_v41 = vadd.f32 %v1479_v40, %v1969_v25  ;;  %v426_v42 = vpop.f32.mrb[5].mxu0 }
  0xf8   : > { %v427_v43 = vadd.f32 %v1969_v25, %v426_v42  ;;  %v1480_v44 = vpop.f32.mrb[6].mxu0  ;;  %1521 = vmatprep.mubr.bf16.mxu0 %v569_v39 }
  0xf9   : > { %v438_v45 = vadd.f32 %v1480_v44, %v1969_v25  ;;  %v429_v46 = vpop.f32.mrb[7].mxu0  ;;  %1522 = vmatmul.mubr.bf16.vlgmr.msra.gmra.mrb[32].mxu0 %v570_v38  ;;  %v543_v48 = vmax.f32 %v435_v41, 0.0 }
  0xfa   : > { %v430_v47 = vadd.f32 %v1969_v25, %v429_v46  ;;  %v541_v50 = vmax.f32 %v427_v43, 0.0 }
  0xfb   : > { %v544_v49 = vmax.f32 %v438_v45, 0.0 }
  0xfc   : > { %v542_v51 = vmax.f32 %v430_v47, 0.0 }
  0xfd   : > { %v572_v52 = vpack.c.bf16 %v544_v49, %v543_v48 }
  0xfe   : > { %v1483_v53 = vpop.f32.mrb[8].mxu0  ;;  %v571_v54 = vpack.c.bf16 %v542_v51, %v541_v50 }
  0xff   : > { %v451_v55 = vadd.f32 %v1483_v53, %v1969_v25  ;;  %v442_v56 = vpop.f32.mrb[9].mxu0 }
 0x100   : > { %v443_v57 = vadd.f32 %v1969_v25, %v442_v56  ;;  %v1484_v58 = vpop.f32.mrb[10].mxu0  ;;  %1525 = vmatprep.mubr.bf16.mxu1 %v571_v54 }
 0x101   : > { %v454_v59 = vadd.f32 %v1484_v58, %v1969_v25  ;;  %v445_v60 = vpop.f32.mrb[11].mxu0  ;;  %1526 = vmatmul.mubr.bf16.vlgmr.msra.gmra.mrb[0].mxu1 %v572_v52  ;;  %v547_v62 = vmax.f32 %v451_v55, 0.0 }
 0x102   : > { %v446_v61 = vadd.f32 %v1969_v25, %v445_v60  ;;  %v545_v0 = vmax.f32 %v443_v57, 0.0 }
 0x103   : > { %v548_v63 = vmax.f32 %v454_v59, 0.0 }
 0x104   : > { %v546_v1 = vmax.f32 %v446_v61, 0.0 }
 0x105   : > { %v574_v2 = vpack.c.bf16 %v548_v63, %v547_v62 }
 0x106   : > { %v573_v3 = vpack.c.bf16 %v546_v1, %v545_v0  ;;  %v1487_v4 = vpop.f32.mrb[12].mxu0 }
 0x107   : > { %v467_v5 = vadd.f32 %v1487_v4, %v1969_v25  ;;  %v458_v6 = vpop.f32.mrb[13].mxu0 }
 0x108   : > { %v459_v7 = vadd.f32 %v1969_v25, %v458_v6  ;;  %v1488_v8 = vpop.f32.mrb[14].mxu0  ;;  %1529 = vmatprep.mubr.bf16.mxu1 %v573_v3 }
 0x109   : > { %v470_v9 = vadd.f32 %v1488_v8, %v1969_v25  ;;  %v461_v10 = vpop.f32.mrb[15].mxu0  ;;  %1530 = vmatmul.mubr.bf16.gmra.mrb[4].mxu1 %v574_v2  ;;  %v551_v12 = vmax.f32 %v467_v5, 0.0 }
 0x10a   : > { %v462_v11 = vadd.f32 %v1969_v25, %v461_v10  ;;  %v549_v14 = vmax.f32 %v459_v7, 0.0 }
 0x10b   : > { %v552_v13 = vmax.f32 %v470_v9, 0.0 }
 0x10c   : > { %v550_v15 = vmax.f32 %v462_v11, 0.0  ;;  %v2006_v11 = vld [vmem:[%s2383_s3 + $0x1] ss:$0 sm:$0xff] }
 0x10d   : > { %v576_v16 = vpack.c.bf16 %v552_v13, %v551_v12 }
 0x10e   : > { %v575_v17 = vpack.c.bf16 %v550_v15, %v549_v14  ;;  %v1491_v18 = vpop.f32.mrb[16].mxu0 }
 0x10f   : > { %v483_v19 = vadd.f32 %v1491_v18, %v1969_v25  ;;  %v474_v20 = vpop.f32.mrb[17].mxu0 }
 0x110   : > { %v475_v21 = vadd.f32 %v1969_v25, %v474_v20  ;;  %v1492_v22 = vpop.f32.mrb[18].mxu0  ;;  %1533 = vmatprep.mubr.bf16.mxu1 %v575_v17 }
 0x111   : > { %v486_v23 = vadd.f32 %v1492_v22, %v1969_v25  ;;  %v477_v24 = vpop.f32.mrb[19].mxu0  ;;  %1534 = vmatmul.mubr.bf16.gmra.mrb[8].mxu1 %v576_v16  ;;  %v555_v27 = vmax.f32 %v483_v19, 0.0 }
 0x112   : > { %v478_v26 = vadd.f32 %v1969_v25, %v477_v24  ;;  %v553_v29 = vmax.f32 %v475_v21, 0.0 }
 0x113   : > { %v556_v28 = vmax.f32 %v486_v23, 0.0 }
 0x114   : > { %v554_v30 = vmax.f32 %v478_v26, 0.0 }
 0x115   : > { %v578_v31 = vpack.c.bf16 %v556_v28, %v555_v27 }
 0x116   : > { %v577_v32 = vpack.c.bf16 %v554_v30, %v553_v29  ;;  %v1495_v33 = vpop.f32.mrb[20].mxu0 }
 0x117   : > { %v499_v34 = vadd.f32 %v1495_v33, %v1969_v25  ;;  %v490_v35 = vpop.f32.mrb[21].mxu0 }
 0x118   : > { %v491_v36 = vadd.f32 %v1969_v25, %v490_v35  ;;  %v1496_v37 = vpop.f32.mrb[22].mxu0  ;;  %1537 = vmatprep.mubr.bf16.mxu1 %v577_v32 }
 0x119   : > { %v559_v38 = vmax.f32 %v499_v34, 0.0  ;;  %v502_v39 = vadd.f32 %v1496_v37, %v1969_v25  ;;  %v493_v40 = vpop.f32.mrb[23].mxu0  ;;  %1538 = vmatmul.mubr.bf16.gmra.mrb[12].mxu1 %v578_v31 }
 0x11a   : > { %v557_v41 = vmax.f32 %v491_v36, 0.0  ;;  %v494_v42 = vadd.f32 %v1969_v25, %v493_v40 }
 0x11b   : > { %v560_v43 = vmax.f32 %v502_v39, 0.0 }
 0x11c   : > { %v558_v44 = vmax.f32 %v494_v42, 0.0 }
 0x11d   : > { %v580_v45 = vpack.c.bf16 %v560_v43, %v559_v38 }
 0x11e   : > { %v579_v46 = vpack.c.bf16 %v558_v44, %v557_v41  ;;  %v1499_v47 = vpop.f32.mrb[24].mxu0 }
 0x11f   : > { %v515_v48 = vadd.f32 %v1499_v47, %v1969_v25  ;;  %v506_v49 = vpop.f32.mrb[25].mxu0 }
 0x120   : > { %1541 = vmatprep.mubr.bf16.mxu1 %v579_v46  ;;  %v507_v50 = vadd.f32 %v1969_v25, %v506_v49  ;;  %v1500_v51 = vpop.f32.mrb[26].mxu0 }
 0x121   : > { %1542 = vmatmul.mubr.bf16.gmra.mrb[16].mxu1 %v580_v45  ;;  %v563_v52 = vmax.f32 %v515_v48, 0.0  ;;  %v518_v53 = vadd.f32 %v1500_v51, %v1969_v25  ;;  %v509_v54 = vpop.f32.mrb[27].mxu0 }
 0x122   : > { %v561_v55 = vmax.f32 %v507_v50, 0.0  ;;  %v510_v56 = vadd.f32 %v1969_v25, %v509_v54 }
 0x123   : > { %v564_v57 = vmax.f32 %v518_v53, 0.0 }
 0x124   : > { %v562_v58 = vmax.f32 %v510_v56, 0.0 }
 0x125   : > { %v582_v59 = vpack.c.bf16 %v564_v57, %v563_v52 }
 0x126   : > { %v581_v60 = vpack.c.bf16 %v562_v58, %v561_v55  ;;  %v1503_v61 = vpop.f32.mrb[28].mxu0 }
 0x127   : > { %v531_v62 = vadd.f32 %v1503_v61, %v1969_v25  ;;  %v522_v63 = vpop.f32.mrb[29].mxu0 }
 0x128   : > { %1545 = vmatprep.mubr.bf16.mxu1 %v581_v60  ;;  %v523_v0 = vadd.f32 %v1969_v25, %v522_v63  ;;  %v1504_v1 = vpop.f32.mrb[30].mxu0 }
 0x129   : > { %1546 = vmatmul.mubr.bf16.gmra.mrb[20].mxu1 %v582_v59  ;;  %v567_v2 = vmax.f32 %v531_v62, 0.0  ;;  %v534_v3 = vadd.f32 %v1504_v1, %v1969_v25  ;;  %v525_v4 = vpop.f32.mrb[31].mxu0 }
 0x12a   : > { %v565_v5 = vmax.f32 %v523_v0, 0.0  ;;  %v526_v6 = vadd.f32 %v1969_v25, %v525_v4 }
 0x12b   : > { %v568_v7 = vmax.f32 %v534_v3, 0.0 }
 0x12c   : > { %v566_v8 = vmax.f32 %v526_v6, 0.0 }
 0x12d   : > { %v584_v9 = vpack.c.bf16 %v568_v7, %v567_v2 }
 0x12e   : > { %v583_v10 = vpack.c.bf16 %v566_v8, %v565_v5 }
 0x130   : > { %1549 = vmatprep.mubr.bf16.mxu1 %v583_v10 }
 0x131   : > { %1550 = vmatmul.mubr.bf16.gmra.mrb[24].mxu1 %v584_v9 }
 0x1cc   : > { %v1523_v12 = vpop.f32.mrb[32].mxu0 }
 0x1cd   : > { %v2009_v13 = vadd.f32 %v1523_v12, %v2006_v11  ;;  %v687_v14 = vpop.f32.mrb[33].mxu0 }
 0x1ce   : > { %v1524_v15 = vpop.f32.mrb[34].mxu0  ;;  %v2016_v17 = vadd.f32 %v2006_v11, %v687_v14 }
 0x1cf   : > { %818 = vmax.xlane.f32.xlu0 %v2009_v13  ;;  %v690_v25 = vpop.f32.mrb[35].mxu0  ;;  %v2021_v19 = vadd.f32 %v1524_v15, %v2006_v11 }
 0x1d0   : > { %v2013_v16 = vadd.f32 %v2006_v11, %v690_v25 }
 0x1d2   : > { %816 = vmax.xlane.f32.xlu1 %v2013_v16 }
 0x1d3   : > { %814 = vmax.xlane.f32.xlu0 %v2016_v17 }
 0x1d4   : > { %v1527_v18 = vpop.f32.mrb[0].mxu1 }
 0x1d5   : > { %v703_v20 = vpop.f32.mrb[1].mxu1  ;;  %v2025_v23 = vadd.f32 %v1527_v18, %v2006_v11 }
 0x1d6   : > { %v1528_v21 = vpop.f32.mrb[2].mxu1  ;;  %v2029_v26 = vadd.f32 %v2006_v11, %v703_v20 }
 0x1d7   : > { %v706_v22 = vpop.f32.mrb[3].mxu1  ;;  %820 = vmax.xlane.f32.xlu0 %v2021_v19  ;;  %v2033_v30 = vadd.f32 %v1528_v21, %v2006_v11 }
 0x1d8   : > { %v2037_v32 = vadd.f32 %v2006_v11, %v706_v22 }
 0x1db   : > { %826 = vmax.xlane.f32.xlu0 %v2025_v23 }
 0x1dc   : > { %v1531_v24 = vpop.f32.mrb[4].mxu1 }
 0x1dd   : > { %v719_v27 = vpop.f32.mrb[5].mxu1  ;;  %v2071_v52 = vadd.f32 %v1531_v24, %v2006_v11 }
 0x1de   : > { %v1532_v28 = vpop.f32.mrb[6].mxu1  ;;  %v2055_v44 = vadd.f32 %v2006_v11, %v719_v27 }
 0x1df   : > { %v722_v29 = vpop.f32.mrb[7].mxu1  ;;  %822 = vmax.xlane.f32.xlu0 %v2029_v26  ;;  %v2079_v56 = vadd.f32 %v1532_v28, %v2006_v11 }
 0x1e0   : > { %v2063_v48 = vadd.f32 %v2006_v11, %v722_v29 }
 0x1e3   : > { %828 = vmax.xlane.f32.xlu0 %v2033_v30 }
 0x1e4   : > { %v1535_v31 = vpop.f32.mrb[8].mxu1 }
 0x1e5   : > { %v735_v33 = vpop.f32.mrb[9].mxu1  ;;  %v2124_v12 = vadd.f32 %v1535_v31, %v2006_v11 }
 0x1e6   : > { %v1536_v34 = vpop.f32.mrb[10].mxu1  ;;  %v2096_v63 = vadd.f32 %v2006_v11, %v735_v33 }
 0x1e7   : > { %v2040_v35 = vadd.f32 %v1536_v34, %v2006_v11  ;;  %v738_v36 = vpop.f32.mrb[11].mxu1  ;;  %824 = vmax.xlane.f32.xlu0 %v2037_v32 }
 0x1e8   : > { %v2107_v4 = vadd.f32 %v2006_v11, %v738_v36 }
 0x1ec   : > { %v1539_v37 = vpop.f32.mrb[12].mxu1 }
 0x1ed   : > { %v2044_v38 = vadd.f32 %v1539_v37, %v2006_v11  ;;  %v751_v39 = vpop.f32.mrb[13].mxu1 }
 0x1ee   : > { %v2047_v40 = vadd.f32 %v2006_v11, %v751_v39  ;;  %v1540_v41 = vpop.f32.mrb[14].mxu1 }
 0x1ef   : > { %v754_v42 = vpop.f32.mrb[15].mxu1  ;;  %850 = vmax.xlane.f32.xlu1 %v2044_v38  ;;  %v2052_v43 = vadd.f32 %v1540_v41, %v2006_v11 }
 0x1f0   : > { %846 = vmax.xlane.f32.xlu0 %v2047_v40  ;;  %v2060_v46 = vadd.f32 %v2006_v11, %v754_v42 }
 0x1f3   : > { %852 = vmax.xlane.f32.xlu1 %v2052_v43 }
 0x1f4   : > { %v1543_v45 = vpop.f32.mrb[16].mxu1  ;;  %830 = vmax.xlane.f32.xlu0 %v2055_v44 }
 0x1f5   : > { %v767_v47 = vpop.f32.mrb[17].mxu1  ;;  %v2068_v51 = vadd.f32 %v1543_v45, %v2006_v11 }
 0x1f6   : > { %v1544_v49 = vpop.f32.mrb[18].mxu1  ;;  %v2076_v54 = vadd.f32 %v2006_v11, %v767_v47 }
 0x1f7   : > { %v770_v50 = vpop.f32.mrb[19].mxu1  ;;  %848 = vmax.xlane.f32.xlu1 %v2060_v46  ;;  %v2093_v62 = vadd.f32 %v1544_v49, %v2006_v11 }
 0x1f8   : > { %832 = vmax.xlane.f32.xlu0 %v2063_v48  ;;  %v2101_v1 = vadd.f32 %v2006_v11, %v770_v50 }
 0x1fb   : > { %858 = vmax.xlane.f32.xlu1 %v2068_v51 }
 0x1fc   : > { %834 = vmax.xlane.f32.xlu0 %v2071_v52  ;;  %v1547_v53 = vpop.f32.mrb[20].mxu1 }
 0x1fd   : > { %v783_v55 = vpop.f32.mrb[21].mxu1  ;;  %v2121_v10 = vadd.f32 %v1547_v53, %v2006_v11 }
 0x1fe   : > { %v2082_v57 = vadd.f32 %v2006_v11, %v783_v55  ;;  %v1548_v58 = vpop.f32.mrb[22].mxu1 }
 0x1ff   : > { %854 = vmax.xlane.f32.xlu1 %v2076_v54  ;;  %v2086_v59 = vadd.f32 %v1548_v58, %v2006_v11  ;;  %v786_v60 = vpop.f32.mrb[23].mxu1 }
 0x200   : > { %836 = vmax.xlane.f32.xlu0 %v2079_v56  ;;  %v2090_v61 = vadd.f32 %v2006_v11, %v786_v60 }
 0x203   : > { %860 = vmax.xlane.f32.xlu1 %v2093_v62 }
 0x204   : > { %838 = vmax.xlane.f32.xlu0 %v2096_v63  ;;  %v1551_v0 = vpop.f32.mrb[24].mxu1 }
 0x205   : > { %v2104_v2 = vadd.f32 %v1551_v0, %v2006_v11  ;;  %v799_v3 = vpop.f32.mrb[25].mxu1 }
 0x206   : > { %v2110_v5 = vadd.f32 %v2006_v11, %v799_v3  ;;  %v1552_v6 = vpop.f32.mrb[26].mxu1 }
 0x207   : > { %856 = vmax.xlane.f32.xlu1 %v2101_v1  ;;  %v2114_v7 = vadd.f32 %v1552_v6, %v2006_v11  ;;  %v802_v8 = vpop.f32.mrb[27].mxu1 }
 0x208   : > { %840 = vmax.xlane.f32.xlu0 %v2107_v4  ;;  %v2118_v9 = vadd.f32 %v2006_v11, %v802_v8 }
 0x20b   : > { %866 = vmax.xlane.f32.xlu1 %v2121_v10 }
 0x20c   : > { %842 = vmax.xlane.f32.xlu0 %v2124_v12 }
 0x20f   : > { %862 = vmax.xlane.f32.xlu1 %v2082_v57 }
 0x210   : > { %844 = vmax.xlane.f32.xlu0 %v2040_v35 }
 0x213   : > { %868 = vmax.xlane.f32.xlu1 %v2086_v59 }
 0x217   : > { %864 = vmax.xlane.f32.xlu1 %v2090_v61 }
 0x21b   : > { %874 = vmax.xlane.f32.xlu1 %v2104_v2 }
 0x21f   : > { %870 = vmax.xlane.f32.xlu1 %v2110_v5 }
 0x223   : > { %872 = vmax.xlane.f32.xlu1 %v2118_v9 }
 0x227   : > { %876 = vmax.xlane.f32.xlu1 %v2114_v7 }
 0x25c   : > { %v819_v11 = vpop.xlane.xlu0 %818 }
 0x25d   : > { %v880_v14 = vsub.f32 %v2009_v13, %v819_v11 }
 0x25f   : > { %v914_v15 = vmul.f32 1.442695, %v880_v14  ;;  %v817_v20 = vpop.xlane.xlu1 %816 }
 0x260   : > { %v815_v25 = vpop.xlane.xlu0 %814  ;;  %v879_v24 = vsub.f32 %v2013_v16, %v817_v20 }
 0x261   : > { %1634 = vpow2.f32 %v914_v15  ;;  %v878_v18 = vsub.f32 %v2016_v17, %v815_v25 }
 0x262   : > { %v912_v31 = vmul.f32 1.442695, %v879_v24 }
 0x263   : > { %v910_v21 = vmul.f32 1.442695, %v878_v18 }
 0x264   : > { %v821_v22 = vpop.xlane.xlu0 %820 }
 0x265   : > { %1636 = vpow2.f32 %v910_v21  ;;  %v881_v27 = vsub.f32 %v2021_v19, %v821_v22 }
 0x267   : > { %v916_v28 = vmul.f32 1.442695, %v881_v27 }
 0x268   : > { %v827_v29 = vpop.xlane.xlu0 %826 }
 0x269   : > { %1638 = vpow2.f32 %v916_v28  ;;  %v884_v33 = vsub.f32 %v2025_v23, %v827_v29 }
 0x26a   : > { %1640 = vpow2.f32 %v912_v31 }
 0x26b   : > { %v2141_v13 = vpop.eup %1634  ;;  %v922_v17 = vmul.f32 1.442695, %v884_v33 }
 0x26c   : > { %978 = vadd.xlane.f32.xlu0 %v2141_v13  ;;  %v823_v34 = vpop.xlane.xlu0 %822 }
 0x26d   : > { %v882_v36 = vsub.f32 %v2029_v26, %v823_v34  ;;  %1642 = vpow2.f32 %v922_v17 }
 0x26f   : > { %v2145_v37 = vpop.eup %1636  ;;  %v918_v19 = vmul.f32 1.442695, %v882_v36 }
 0x270   : > { %974 = vadd.xlane.f32.xlu0 %v2145_v37  ;;  %v829_v16 = vpop.xlane.xlu0 %828 }
 0x271   : > { %v885_v39 = vsub.f32 %v2033_v30, %v829_v16  ;;  %1644 = vpow2.f32 %v918_v19 }
 0x273   : > { %v2149_v41 = vpop.eup %1638  ;;  %v924_v42 = vmul.f32 1.442695, %v885_v39 }
 0x274   : > { %980 = vadd.xlane.f32.xlu0 %v2149_v41  ;;  %v825_v23 = vpop.xlane.xlu0 %824  ;;  %v2153_v47 = vpop.eup %1640 }
 0x275   : > { %v883_v45 = vsub.f32 %v2037_v32, %v825_v23  ;;  %1646 = vpow2.f32 %v924_v42 }
 0x277   : > { %v920_v26 = vmul.f32 1.442695, %v883_v45  ;;  %v2156_v49 = vpop.eup %1642 }
 0x278   : > { %976 = vadd.xlane.f32.xlu0 %v2153_v47 }
 0x279   : > { %1648 = vpow2.f32 %v920_v26 }
 0x27b   : > { %v2161_v58 = vpop.eup %1644 }
 0x27c   : > { %v851_v50 = vpop.xlane.xlu1 %850  ;;  %986 = vadd.xlane.f32.xlu0 %v2156_v49 }
 0x27d   : > { %v896_v30 = vsub.f32 %v2044_v38, %v851_v50  ;;  %v847_v53 = vpop.xlane.xlu0 %846 }
 0x27e   : > { %v894_v55 = vsub.f32 %v2047_v40, %v847_v53 }
 0x27f   : > { %v946_v32 = vmul.f32 1.442695, %v896_v30  ;;  %v2165_v8 = vpop.eup %1646 }
 0x280   : > { %v853_v60 = vpop.xlane.xlu1 %852  ;;  %982 = vadd.xlane.f32.xlu0 %v2161_v58  ;;  %v942_v0 = vmul.f32 1.442695, %v894_v55 }
 0x281   : > { %1650 = vpow2.f32 %v946_v32  ;;  %v897_v3 = vsub.f32 %v2052_v43, %v853_v60  ;;  %v831_v6 = vpop.xlane.xlu0 %830 }
 0x282   : > { %1652 = vpow2.f32 %v942_v0  ;;  %v886_v21 = vsub.f32 %v2055_v44, %v831_v6 }
 0x283   : > { %v948_v38 = vmul.f32 1.442695, %v897_v3  ;;  %v2169_v15 = vpop.eup %1648 }
 0x284   : > { %v849_v11 = vpop.xlane.xlu1 %848  ;;  %988 = vadd.xlane.f32.xlu0 %v2165_v8  ;;  %v926_v33 = vmul.f32 1.442695, %v886_v21 }
 0x285   : > { %v895_v40 = vsub.f32 %v2060_v46, %v849_v11  ;;  %v833_v14 = vpop.xlane.xlu0 %832  ;;  %1654 = vpow2.f32 %v948_v38 }
 0x286   : > { %v887_v16 = vsub.f32 %v2063_v48, %v833_v14 }
 0x287   : > { %v944_v18 = vmul.f32 1.442695, %v895_v40 }
 0x288   : > { %v859_v25 = vpop.xlane.xlu1 %858  ;;  %984 = vadd.xlane.f32.xlu0 %v2169_v15  ;;  %v928_v45 = vmul.f32 1.442695, %v887_v16 }
 0x289   : > { %v900_v43 = vsub.f32 %v2068_v51, %v859_v25  ;;  %v835_v20 = vpop.xlane.xlu0 %834  ;;  %1656 = vpow2.f32 %v944_v18 }
 0x28a   : > { %v888_v22 = vsub.f32 %v2071_v52, %v835_v20 }
 0x28b   : > { %v2175_v24 = vpop.eup %1650  ;;  %v954_v28 = vmul.f32 1.442695, %v900_v43 }
 0x28c   : > { %v930_v27 = vmul.f32 1.442695, %v888_v22  ;;  %1010 = vadd.xlane.f32.xlu1 %v2175_v24  ;;  %v855_v46 = vpop.xlane.xlu1 %854  ;;  %v2180_v34 = vpop.eup %1652 }
 0x28d   : > { %v898_v29 = vsub.f32 %v2076_v54, %v855_v46  ;;  %v837_v31 = vpop.xlane.xlu0 %836 }
 0x28e   : > { %1658 = vpow2.f32 %v930_v27  ;;  %v889_v51 = vsub.f32 %v2079_v56, %v837_v31 }
 0x28f   : > { %1660 = vpow2.f32 %v954_v28  ;;  %v950_v52 = vmul.f32 1.442695, %v898_v29  ;;  %v2185_v54 = vpop.eup %1654 }
 0x290   : > { %v861_v44 = vpop.xlane.xlu1 %860  ;;  %1006 = vadd.xlane.f32.xlu1 %v2180_v34  ;;  %1662 = vpow2.f32 %v926_v33  ;;  %v932_v19 = vmul.f32 1.442695, %v889_v51 }
 0x291   : > { %v901_v17 = vsub.f32 %v2093_v62, %v861_v44  ;;  %v839_v36 = vpop.xlane.xlu0 %838  ;;  %1664 = vpow2.f32 %v950_v52 }
 0x292   : > { %1666 = vpow2.f32 %v932_v19 }
 0x293   : > { %v956_v56 = vmul.f32 1.442695, %v901_v17  ;;  %v2189_v26 = vpop.eup %1656 }
 0x294   : > { %v857_v39 = vpop.xlane.xlu1 %856  ;;  %1012 = vadd.xlane.f32.xlu1 %v2185_v54 }
 0x295   : > { %v899_v23 = vsub.f32 %v2101_v1, %v857_v39  ;;  %v841_v42 = vpop.xlane.xlu0 %840  ;;  %1668 = vpow2.f32 %v956_v56  ;;  %v890_v1 = vsub.f32 %v2096_v63, %v839_v36 }
 0x296   : > { %1670 = vpow2.f32 %v928_v45 }
 0x297   : > { %v952_v48 = vmul.f32 1.442695, %v899_v23  ;;  %v934_v38 = vmul.f32 1.442695, %v890_v1 }
 0x298   : > { %v2191_v62 = vpop.eup %1658  ;;  %v867_v50 = vpop.xlane.xlu1 %866  ;;  %1008 = vadd.xlane.f32.xlu1 %v2189_v26 }
 0x299   : > { %v904_v30 = vsub.f32 %v2121_v10, %v867_v50  ;;  %994 = vadd.xlane.f32.xlu0 %v2191_v62  ;;  %v843_v53 = vpop.xlane.xlu0 %842  ;;  %v2198_v32 = vpop.eup %1660  ;;  %1672 = vpow2.f32 %v952_v48 }
 0x29a   : > { %v892_v55 = vsub.f32 %v2124_v12, %v843_v53  ;;  %v2200_v60 = vpop.eup %1662 }
 0x29b   : > { %v962_v6 = vmul.f32 1.442695, %v904_v30  ;;  %v2206_v12 = vpop.eup %1664 }
 0x29c   : > { %v938_v0 = vmul.f32 1.442695, %v892_v55  ;;  %v863_v3 = vpop.xlane.xlu1 %862  ;;  %1018 = vadd.xlane.f32.xlu1 %v2198_v32  ;;  %v2208_v40 = vpop.eup %1666 }
 0x29d   : > { %v902_v10 = vsub.f32 %v2082_v57, %v863_v3  ;;  %990 = vadd.xlane.f32.xlu0 %v2200_v60  ;;  %v845_v11 = vpop.xlane.xlu0 %844  ;;  %v891_v57 = vsub.f32 %v2107_v4, %v841_v42 }
 0x29e   : > { %1674 = vpow2.f32 %v938_v0  ;;  %v893_v63 = vsub.f32 %v2040_v35, %v845_v11 }
 0x29f   : > { %1676 = vpow2.f32 %v962_v6  ;;  %v958_v25 = vmul.f32 1.442695, %v902_v10  ;;  %v2214_v20 = vpop.eup %1668 }
 0x2a0   : > { %v869_v14 = vpop.xlane.xlu1 %868  ;;  %1014 = vadd.xlane.f32.xlu1 %v2206_v12  ;;  %1678 = vpow2.f32 %v934_v38  ;;  %v940_v43 = vmul.f32 1.442695, %v893_v63  ;;  %v2216_v35 = vpop.eup %1670  ;;  %v2268_v38 = vld [vmem:[%s2383_s3 + $0x2] ss:$0 sm:$0xff] }
 0x2a1   : > { %v905_v18 = vsub.f32 %v2086_v59, %v869_v14  ;;  %996 = vadd.xlane.f32.xlu0 %v2208_v40  ;;  %1680 = vpow2.f32 %v958_v25  ;;  %v936_v59 = vmul.f32 1.442695, %v891_v57 }
 0x2a2   : > { %1682 = vpow2.f32 %v940_v43 }
 0x2a3   : > { %v964_v22 = vmul.f32 1.442695, %v905_v18  ;;  %v2221_v46 = vpop.eup %1672 }
 0x2a4   : > { %v865_v21 = vpop.xlane.xlu1 %864  ;;  %1020 = vadd.xlane.f32.xlu1 %v2214_v20 }
 0x2a5   : > { %v903_v27 = vsub.f32 %v2090_v61, %v865_v21  ;;  %992 = vadd.xlane.f32.xlu0 %v2216_v35  ;;  %1684 = vpow2.f32 %v964_v22 }
 0x2a6   : > { %1686 = vpow2.f32 %v936_v59 }
 0x2a7   : > { %v960_v29 = vmul.f32 1.442695, %v903_v27 }
 0x2a8   : > { %v2223_v28 = vpop.eup %1674  ;;  %v875_v4 = vpop.xlane.xlu1 %874  ;;  %1016 = vadd.xlane.f32.xlu1 %v2221_v46 }
 0x2a9   : > { %v908_v31 = vsub.f32 %v2104_v2, %v875_v4  ;;  %1002 = vadd.xlane.f32.xlu0 %v2223_v28  ;;  %v2228_v33 = vpop.eup %1676  ;;  %1688 = vpow2.f32 %v960_v29 }
 0x2aa   : > { %v2230_v61 = vpop.eup %1678 }
 0x2ab   : > { %v970_v44 = vmul.f32 1.442695, %v908_v31  ;;  %v2235_v17 = vpop.eup %1680 }
 0x2ac   : > { %v871_v51 = vpop.xlane.xlu1 %870  ;;  %1026 = vadd.xlane.f32.xlu1 %v2228_v33  ;;  %v2237_v36 = vpop.eup %1682 }
 0x2ad   : > { %v906_v52 = vsub.f32 %v2110_v5, %v871_v51  ;;  %998 = vadd.xlane.f32.xlu0 %v2230_v61  ;;  %1690 = vpow2.f32 %v970_v44 }
 0x2af   : > { %v966_v16 = vmul.f32 1.442695, %v906_v52  ;;  %v2241_v19 = vpop.eup %1684 }
 0x2b0   : > { %v873_v2 = vpop.xlane.xlu1 %872  ;;  %1022 = vadd.xlane.f32.xlu1 %v2235_v17  ;;  %v2243_v39 = vpop.eup %1686 }
 0x2b1   : > { %1004 = vadd.xlane.f32.xlu0 %v2237_v36  ;;  %1692 = vpow2.f32 %v966_v16  ;;  %v907_v5 = vsub.f32 %v2118_v9, %v873_v2 }
 0x2b3   : > { %v2249_v42 = vpop.eup %1688  ;;  %v968_v50 = vmul.f32 1.442695, %v907_v5 }
 0x2b4   : > { %v877_v56 = vpop.xlane.xlu1 %876  ;;  %1028 = vadd.xlane.f32.xlu1 %v2241_v19 }
 0x2b5   : > { %v909_v23 = vsub.f32 %v2114_v7, %v877_v56  ;;  %1000 = vadd.xlane.f32.xlu0 %v2243_v39 }
 0x2b7   : > { %v972_v45 = vmul.f32 1.442695, %v909_v23  ;;  %v2252_v48 = vpop.eup %1690 }
 0x2b8   : > { %1024 = vadd.xlane.f32.xlu1 %v2249_v42 }
 0x2b9   : > { %1694 = vpow2.f32 %v972_v45 }
 0x2ba   : > { %1696 = vpow2.f32 %v968_v50 }
 0x2bb   : > { %v2255_v30 = vpop.eup %1692 }
 0x2bc   : > { %1034 = vadd.xlane.f32.xlu1 %v2252_v48 }
 0x2c0   : > { %1030 = vadd.xlane.f32.xlu1 %v2255_v30 }
 0x2c3   : > { %v2258_v9 = vpop.eup %1694 }
 0x2c4   : > { %1036 = vadd.xlane.f32.xlu1 %v2258_v9  ;;  %v2261_v7 = vpop.eup %1696 }
 0x2c8   : > { %1032 = vadd.xlane.f32.xlu1 %v2261_v7 }
 0x2f9   : > { %v979_v53 = vpop.xlane.xlu0 %978 }
 0x2fd   : > { %v975_v1 = vpop.xlane.xlu0 %974 }
 0x2fe   : > { %1698 = vrcp.f32 %v975_v1 }
 0x2ff   : > { %1700 = vrcp.f32 %v979_v53 }
 0x301   : > { %v981_v55 = vpop.xlane.xlu0 %980 }
 0x305   : > { %v977_v0 = vpop.xlane.xlu0 %976 }
 0x306   : > { %1702 = vrcp.f32 %v977_v0 }
 0x307   : > { %1704 = vrcp.f32 %v981_v55 }
 0x308   : > { %v1699_v3 = vpop.eup %1698 }
 0x309   : > { %v987_v6 = vpop.xlane.xlu0 %986  ;;  %v1070_v10 = vmul.f32 %v1699_v3, %v2145_v37  ;;  %v1701_v25 = vpop.eup %1700 }
 0x30a   : > { %v1072_v21 = vmul.f32 %v1701_v25, %v2141_v13 }
 0x30b   : > { %v1102_v11 = vmax.f32 %v1070_v10, 0.001 }
 0x30c   : > { %v1104_v4 = vmax.f32 %v1072_v21, 0.001 }
 0x30d   : > { %v983_v63 = vpop.xlane.xlu0 %982  ;;  %v1138_v14 = vmul.f32 %v2268_v38, %v1102_v11 }
 0x30e   : > { %1706 = vrcp.f32 %v983_v63  ;;  %v1140_v44 = vmul.f32 %v2268_v38, %v1104_v4 }
 0x30f   : > { %1170 = vxpose.xlu0.b32.start [1/16] %v1138_v14, 128  ;;  %1708 = vrcp.f32 %v987_v6 }
 0x310   : > { %v1703_v18 = vpop.eup %1702 }
 0x311   : > { %v989_v57 = vpop.xlane.xlu0 %988  ;;  %v1071_v43 = vmul.f32 %v1703_v18, %v2153_v47  ;;  %v1705_v22 = vpop.eup %1704 }
 0x312   : > { %v1073_v29 = vmul.f32 %v1705_v22, %v2149_v41 }
 0x313   : > { %v1103_v37 = vmax.f32 %v1071_v43, 0.001 }
 0x314   : > { %v1105_v52 = vmax.f32 %v1073_v29, 0.001 }
 0x315   : > { %v985_v27 = vpop.xlane.xlu0 %984  ;;  %v1139_v59 = vmul.f32 %v2268_v38, %v1103_v37 }
 0x316   : > { %1710 = vrcp.f32 %v985_v27  ;;  %v1141_v2 = vmul.f32 %v2268_v38, %v1105_v52 }
 0x317   : > { %1171 = vxpose.xlu0.b32.cont [2/16] %v1139_v59, 128  ;;  %1712 = vrcp.f32 %v989_v57 }
 0x318   : > { %v1707_v31 = vpop.eup %1706 }
 0x319   : > { %v1011_v51 = vpop.xlane.xlu1 %1010  ;;  %v1074_v47 = vmul.f32 %v1707_v31, %v2161_v58  ;;  %v1709_v56 = vpop.eup %1708 }
 0x31a   : > { %v1076_v50 = vmul.f32 %v1709_v56, %v2156_v49 }
 0x31b   : > { %1172 = vxpose.xlu0.b32.cont [3/16] %v1140_v44, 128  ;;  %v1106_v16 = vmax.f32 %v1074_v47, 0.001 }
 0x31c   : > { %v1108_v0 = vmax.f32 %v1076_v50, 0.001 }
 0x31d   : > { %v1007_v13 = vpop.xlane.xlu1 %1006  ;;  %v1142_v23 = vmul.f32 %v2268_v38, %v1106_v16 }
 0x31e   : > { %1714 = vrcp.f32 %v1007_v13 }
 0x31f   : > { %1173 = vxpose.xlu0.b32.cont [4/16] %v1141_v2, 128  ;;  %1716 = vrcp.f32 %v1011_v51 }
 0x320   : > { %v1711_v5 = vpop.eup %1710 }
 0x321   : > { %v1013_v41 = vpop.xlane.xlu1 %1012  ;;  %v1075_v45 = vmul.f32 %v1711_v5, %v2169_v15  ;;  %v1713_v53 = vpop.eup %1712  ;;  %v1144_v15 = vmul.f32 %v2268_v38, %v1108_v0 }
 0x322   : > { %v1077_v3 = vmul.f32 %v1713_v53, %v2165_v8 }
 0x323   : > { %1174 = vxpose.xlu0.b32.cont [5/16] %v1142_v23, 128  ;;  %v1107_v1 = vmax.f32 %v1075_v45, 0.001 }
 0x324   : > { %v1109_v63 = vmax.f32 %v1077_v3, 0.001 }
 0x325   : > { %v1009_v58 = vpop.xlane.xlu1 %1008  ;;  %v1143_v55 = vmul.f32 %v2268_v38, %v1107_v1 }
 0x326   : > { %1718 = vrcp.f32 %v1009_v58  ;;  %v995_v6 = vpop.xlane.xlu0 %994  ;;  %v1145_v8 = vmul.f32 %v2268_v38, %v1109_v63 }
 0x327   : > { %1175 = vxpose.xlu0.b32.cont [6/16] %v1143_v55, 128  ;;  %1720 = vrcp.f32 %v1013_v41 }
 0x328   : > { %v1715_v10 = vpop.eup %1714 }
 0x329   : > { %v1019_v11 = vpop.xlane.xlu1 %1018  ;;  %v1086_v49 = vmul.f32 %v1715_v10, %v2180_v34  ;;  %v1717_v43 = vpop.eup %1716 }
 0x32a   : > { %v991_v14 = vpop.xlane.xlu0 %990  ;;  %v1088_v27 = vmul.f32 %v1717_v43, %v2175_v24 }
 0x32b   : > { %1722 = vrcp.f32 %v991_v14  ;;  %1176 = vxpose.xlu0.b32.cont [7/16] %v1144_v15, 128  ;;  %v1118_v25 = vmax.f32 %v1086_v49, 0.001 }
 0x32c   : > { %v1120_v52 = vmax.f32 %v1088_v27, 0.001 }
 0x32d   : > { %v1015_v18 = vpop.xlane.xlu1 %1014  ;;  %v1154_v57 = vmul.f32 %v2268_v38, %v1118_v25 }
 0x32e   : > { %1724 = vrcp.f32 %v1015_v18  ;;  %v997_v21 = vpop.xlane.xlu0 %996  ;;  %v1156_v56 = vmul.f32 %v2268_v38, %v1120_v52 }
 0x32f   : > { %1202 = vxpose.xlu1.b32.start [1/16] %v1154_v57, 128  ;;  %1177 = vxpose.xlu0.b32.cont [8/16] %v1145_v8, 128  ;;  %1726 = vrcp.f32 %v995_v6 }
 0x330   : > { %v1719_v22 = vpop.eup %1718 }
 0x331   : > { %v1021_v37 = vpop.xlane.xlu1 %1020  ;;  %v1087_v34 = vmul.f32 %v1719_v22, %v2189_v26  ;;  %v1721_v59 = vpop.eup %1720 }
 0x332   : > { %v993_v4 = vpop.xlane.xlu0 %992  ;;  %v1089_v47 = vmul.f32 %v1721_v59, %v2185_v54 }
 0x333   : > { %1728 = vrcp.f32 %v993_v4  ;;  %v1119_v29 = vmax.f32 %v1087_v34, 0.001 }
 0x334   : > { %1730 = vrcp.f32 %v1019_v11  ;;  %v1121_v5 = vmax.f32 %v1089_v47, 0.001 }
 0x335   : > { %v1723_v31 = vpop.eup %1722  ;;  %1732 = vrcp.f32 %v997_v21  ;;  %v1017_v51 = vpop.xlane.xlu1 %1016  ;;  %v1155_v44 = vmul.f32 %v2268_v38, %v1119_v29 }
 0x336   : > { %1734 = vrcp.f32 %v1017_v51  ;;  %v1003_v13 = vpop.xlane.xlu0 %1002  ;;  %v1078_v2 = vmul.f32 %v1723_v31, %v2200_v60  ;;  %v1157_v60 = vmul.f32 %v2268_v38, %v1121_v5 }
 0x337   : > { %1203 = vxpose.xlu1.b32.cont [2/16] %v1155_v44, 128  ;;  %1736 = vrcp.f32 %v1021_v37 }
 0x338   : > { %v1725_v26 = vpop.eup %1724  ;;  %v1110_v24 = vmax.f32 %v1078_v2, 0.001 }
 0x339   : > { %v1027_v16 = vpop.xlane.xlu1 %1026  ;;  %v1090_v41 = vmul.f32 %v1725_v26, %v2206_v12  ;;  %v1727_v50 = vpop.eup %1726 }
 0x33a   : > { %v999_v23 = vpop.xlane.xlu0 %998  ;;  %v1146_v45 = vmul.f32 %v2268_v38, %v1110_v24  ;;  %v1080_v3 = vmul.f32 %v1727_v50, %v2191_v62 }
 0x33b   : > { %1738 = vrcp.f32 %v999_v23  ;;  %1204 = vxpose.xlu1.b32.cont [3/16] %v1156_v56, 128  ;;  %v1122_v1 = vmax.f32 %v1090_v41, 0.001 }
 0x33c   : > { %1178 = vxpose.xlu0.b32.cont [9/16] %v1146_v45, 128  ;;  %v1112_v57 = vmax.f32 %v1080_v3, 0.001 }
 0x33d   : > { %v1729_v54 = vpop.eup %1728  ;;  %v1023_v53 = vpop.xlane.xlu1 %1022  ;;  %v1158_v15 = vmul.f32 %v2268_v38, %v1122_v1 }
 0x33e   : > { %v1731_v58 = vpop.eup %1730  ;;  %1740 = vrcp.f32 %v1023_v53  ;;  %v1005_v55 = vpop.xlane.xlu0 %1004  ;;  %v1079_v0 = vmul.f32 %v1729_v54, %v2216_v35  ;;  %v1148_v22 = vmul.f32 %v2268_v38, %v1112_v57 }
 0x33f   : > { %v1733_v12 = vpop.eup %1732  ;;  %1205 = vxpose.xlu1.b32.cont [4/16] %v1157_v60, 128  ;;  %1742 = vrcp.f32 %v1003_v13  ;;  %v1092_v63 = vmul.f32 %v1731_v58, %v2198_v32 }
 0x340   : > { %v1735_v6 = vpop.eup %1734  ;;  %v1111_v10 = vmax.f32 %v1079_v0, 0.001  ;;  %v1081_v35 = vmul.f32 %v1733_v12, %v2208_v40 }
 0x341   : > { %v1029_v11 = vpop.xlane.xlu1 %1028  ;;  %v1091_v49 = vmul.f32 %v1735_v6, %v2221_v46  ;;  %v1737_v14 = vpop.eup %1736  ;;  %v1124_v46 = vmax.f32 %v1092_v63, 0.001 }
 0x342   : > { %v1001_v25 = vpop.xlane.xlu0 %1000  ;;  %v1147_v18 = vmul.f32 %v2268_v38, %v1111_v10  ;;  %v1093_v32 = vmul.f32 %v1737_v14, %v2214_v20  ;;  %v1113_v37 = vmax.f32 %v1081_v35, 0.001 }
 0x343   : > { %1744 = vrcp.f32 %v1001_v25  ;;  %1206 = vxpose.xlu1.b32.cont [5/16] %v1158_v15, 128  ;;  %v1123_v62 = vmax.f32 %v1091_v49, 0.001  ;;  %v1160_v59 = vmul.f32 %v2268_v38, %v1124_v46 }
 0x344   : > { %1746 = vrcp.f32 %v1027_v16  ;;  %1179 = vxpose.xlu0.b32.cont [10/16] %v1147_v18, 128  ;;  %v1125_v4 = vmax.f32 %v1093_v32, 0.001  ;;  %v1149_v31 = vmul.f32 %v2268_v38, %v1113_v37 }
 0x345   : > { %v1739_v8 = vpop.eup %1738  ;;  %1748 = vrcp.f32 %v1005_v55  ;;  %v1025_v43 = vpop.xlane.xlu1 %1024  ;;  %v1159_v21 = vmul.f32 %v2268_v38, %v1123_v62 }
 0x346   : > { %1750 = vrcp.f32 %v1025_v43  ;;  %v1082_v34 = vmul.f32 %v1739_v8, %v2230_v61  ;;  %v1161_v61 = vmul.f32 %v2268_v38, %v1125_v4 }
 0x347   : > { %1207 = vxpose.xlu1.b32.cont [6/16] %v1159_v21, 128  ;;  %1752 = vrcp.f32 %v1029_v11 }
 0x348   : > { %v1741_v40 = vpop.eup %1740  ;;  %1180 = vxpose.xlu0.b32.cont [11/16] %v1148_v22, 128  ;;  %v1114_v51 = vmax.f32 %v1082_v34, 0.001 }
 0x349   : > { %v1035_v27 = vpop.xlane.xlu1 %1034  ;;  %v1094_v29 = vmul.f32 %v1741_v40, %v2235_v17  ;;  %v1743_v20 = vpop.eup %1742 }
 0x34a   : > { %v1150_v2 = vmul.f32 %v2268_v38, %v1114_v51  ;;  %v1084_v24 = vmul.f32 %v1743_v20, %v2223_v28 }
 0x34b   : > { %1208 = vxpose.xlu1.b32.cont [7/16] %v1160_v59, 128  ;;  %v1126_v47 = vmax.f32 %v1094_v29, 0.001 }
 0x34c   : > { %1181 = vxpose.xlu0.b32.cont [12/16] %v1149_v31, 128  ;;  %v1116_v53 = vmax.f32 %v1084_v24, 0.001 }
 0x34d   : > { %v1745_v44 = vpop.eup %1744  ;;  %v1031_v52 = vpop.xlane.xlu1 %1030  ;;  %v1162_v41 = vmul.f32 %v2268_v38, %v1126_v47 }
 0x34e   : > { %v1747_v13 = vpop.eup %1746  ;;  %1754 = vrcp.f32 %v1031_v52  ;;  %v1083_v26 = vmul.f32 %v1745_v44, %v2243_v39 }
 0x34f   : > { %v1749_v17 = vpop.eup %1748  ;;  %1209 = vxpose.xlu1.b32.cont [8/16] %v1161_v61, 128  ;;  %v1096_v45 = vmul.f32 %v1747_v13, %v2228_v33  ;;  %1756 = vrcp.f32 %v1035_v27 }
 0x350   : > { %v1751_v16 = vpop.eup %1750  ;;  %1182 = vxpose.xlu0.b32.cont [13/16] %v1150_v2, 128  ;;  %v1115_v56 = vmax.f32 %v1083_v26, 0.001  ;;  %v1085_v39 = vmul.f32 %v1749_v17, %v2237_v36 }
 0x351   : > { %v1037_v5 = vpop.xlane.xlu1 %1036  ;;  %v1095_v23 = vmul.f32 %v1751_v16, %v2249_v42  ;;  %v1753_v50 = vpop.eup %1752  ;;  %v1128_v58 = vmax.f32 %v1096_v45, 0.001  ;;  %v1152_v42 = vmul.f32 %v2268_v38, %v1116_v53 }
 0x352   : > { %v1151_v54 = vmul.f32 %v2268_v38, %v1115_v56  ;;  %v1097_v55 = vmul.f32 %v1753_v50, %v2241_v19  ;;  %v1117_v33 = vmax.f32 %v1085_v39, 0.001 }
 0x353   : > { %1210 = vxpose.xlu1.b32.cont [9/16] %v1162_v41, 128  ;;  %v1127_v28 = vmax.f32 %v1095_v23, 0.001  ;;  %v1164_v36 = vmul.f32 %v2268_v38, %v1128_v58 }
 0x354   : > { %1183 = vxpose.xlu0.b32.cont [14/16] %v1151_v54, 128  ;;  %v1129_v3 = vmax.f32 %v1097_v55, 0.001  ;;  %v1153_v6 = vmul.f32 %v2268_v38, %v1117_v33 }
 0x355   : > { %v1033_v60 = vpop.xlane.xlu1 %1032  ;;  %v1163_v1 = vmul.f32 %v2268_v38, %v1127_v28 }
 0x356   : > { %1758 = vrcp.f32 %v1033_v60  ;;  %v1165_v10 = vmul.f32 %v2268_v38, %v1129_v3 }
 0x357   : > { %1211 = vxpose.xlu1.b32.cont [10/16] %v1163_v1, 128  ;;  %1760 = vrcp.f32 %v1037_v5 }
 0x358   : > { %v1755_v0 = vpop.eup %1754  ;;  %1184 = vxpose.xlu0.b32.cont [15/16] %v1152_v42, 128 }
 0x359   : > { %v1098_v12 = vmul.f32 %v1755_v0, %v2255_v30  ;;  %v1757_v11 = vpop.eup %1756 }
 0x35a   : > { %v1100_v14 = vmul.f32 %v1757_v11, %v2252_v48 }
 0x35b   : > { %1212 = vxpose.xlu1.b32.cont [11/16] %v1164_v36, 128  ;;  %v1130_v19 = vmax.f32 %v1098_v12, 0.001 }
 0x35c   : > { %1185 = vxpose.xlu0.b32.end [16/16] %v1153_v6, 128  ;;  %v1132_v57 = vmax.f32 %v1100_v14, 0.001 }
 0x35d   : > { %v1166_v49 = vmul.f32 %v2268_v38, %v1130_v19 }
 0x35e   : > { %v1168_v62 = vmul.f32 %v2268_v38, %v1132_v57 }
 0x35f   : > { %1213 = vxpose.xlu1.b32.cont [12/16] %v1165_v10, 128 }
 0x360   : > { %v1759_v15 = vpop.eup %1758 }
 0x361   : > { %v1099_v63 = vmul.f32 %v1759_v15, %v2261_v7  ;;  %v1761_v25 = vpop.eup %1760 }
 0x362   : > { %v1101_v35 = vmul.f32 %v1761_v25, %v2258_v9 }
 0x363   : > { %1214 = vxpose.xlu1.b32.cont [13/16] %v1166_v49, 128  ;;  %v1131_v18 = vmax.f32 %v1099_v63, 0.001 }
 0x364   : > { %v1133_v8 = vmax.f32 %v1101_v35, 0.001 }
 0x365   : > { %v1167_v30 = vmul.f32 %v2268_v38, %v1131_v18 }
 0x366   : > { %v1169_v43 = vmul.f32 %v2268_v38, %v1133_v8 }
 0x367   : > { %1215 = vxpose.xlu1.b32.cont [14/16] %v1167_v30, 128 }
 0x36b   : > { %1216 = vxpose.xlu1.b32.cont [15/16] %v1168_v62, 128 }
 0x36f   : > { %1217 = vxpose.xlu1.b32.end [16/16] %v1169_v43, 128 }
 0x3a0   : > { %v1186_v21 = vpop.trf.xlu0 }
 0x3a4   : > { %v1187_v7 = vpop.trf.xlu0 }
 0x3a5   : > { %v1234_v40 = vadd.f32 %v1187_v7, %v1186_v21 }
 0x3a8   : > { %v1188_v46 = vpop.trf.xlu0 }
 0x3a9   : > { %v1235_v9 = vadd.f32 %v1234_v40, %v1188_v46 }
 0x3ac   : > { %v1189_v48 = vpop.trf.xlu0 }
 0x3ad   : > { %v1236_v31 = vadd.f32 %v1235_v9, %v1189_v48 }
 0x3b0   : > { %v1190_v32 = vpop.trf.xlu0 }
 0x3b1   : > { %v1237_v44 = vadd.f32 %v1236_v31, %v1190_v32  ;;  %v1826_v32 = vmov 1966171168  }
 0x3b3   : > { %v1218_v22 = vpop.trf.xlu1 }
 0x3b4   : > { %v1191_v37 = vpop.trf.xlu0 }
 0x3b5   : > { %v1238_v61 = vadd.f32 %v1237_v44, %v1191_v37  ;;  %v1282_v37 = vlaneseq }
 0x3b7   : > { %v1219_v34 = vpop.trf.xlu1  ;;  %v1283_v9 = vshrl.u32 %v1282_v37, 7  ;;  %vm1296_vm1 = vcmp.lt.s32.totalorder %v1282_v37, 256 }
 0x3b8   : > { %v1192_v27 = vpop.trf.xlu0  ;;  %v1255_v5 = vadd.f32 %v1219_v34, %v1218_v22  ;;  %v1280_v22 = vunpack.c.l.s4 %v1826_v32 }
 0x3b9   : > { %v1239_v2 = vadd.f32 %v1238_v61, %v1192_v27 }
 0x3bb   : > { %v1220_v59 = vpop.trf.xlu1 }
 0x3bc   : > { %v1193_v4 = vpop.trf.xlu0  ;;  %v1256_v45 = vadd.f32 %v1255_v5, %v1220_v59  ;;  %v1281_v59 = vunpack.c.0.s8 %v1280_v22 }
 0x3bd   : > { %v1240_v17 = vadd.f32 %v1239_v2, %v1193_v4 }
 0x3bf   : > { %v1221_v29 = vpop.trf.xlu1 }
 0x3c0   : > { %v1194_v51 = vpop.trf.xlu0  ;;  %v1257_v54 = vadd.f32 %v1256_v45, %v1221_v29 }
 0x3c1   : > { %v1241_v41 = vadd.f32 %v1240_v17, %v1194_v51  ;;  %v1284_v51 = vsub.s32 %v1281_v59, %v1283_v9 }
 0x3c3   : > { %v1222_v20 = vpop.trf.xlu1 }
 0x3c4   : > { %v1195_v38 = vpop.trf.xlu0  ;;  %v1258_v39 = vadd.f32 %v1257_v54, %v1222_v20 }
 0x3c5   : > { %v1242_v53 = vadd.f32 %v1241_v41, %v1195_v38 }
 0x3c7   : > { %v1223_v52 = vpop.trf.xlu1 }
 0x3c8   : > { %v1196_v47 = vpop.trf.xlu0  ;;  %v1259_v58 = vadd.f32 %v1258_v39, %v1223_v52 }
 0x3c9   : > { %v1243_v28 = vadd.f32 %v1242_v53, %v1196_v47 }
 0x3cb   : > { %v1224_v13 = vpop.trf.xlu1 }
 0x3cc   : > { %v1197_v26 = vpop.trf.xlu0  ;;  %v1260_v42 = vadd.f32 %v1259_v58, %v1224_v13 }
 0x3cd   : > { %v1244_v55 = vadd.f32 %v1243_v28, %v1197_v26 }
 0x3cf   : > { %v1225_v24 = vpop.trf.xlu1 }
 0x3d0   : > { %v1198_v16 = vpop.trf.xlu0  ;;  %v1261_v36 = vadd.f32 %v1260_v42, %v1225_v24 }
 0x3d1   : > { %v1245_v33 = vadd.f32 %v1244_v55, %v1198_v16 }
 0x3d3   : > { %v1226_v56 = vpop.trf.xlu1 }
 0x3d4   : > { %v1199_v23 = vpop.trf.xlu0  ;;  %v1262_v6 = vadd.f32 %v1261_v36, %v1226_v56 }
 0x3d5   : > { %v1246_v3 = vadd.f32 %v1245_v33, %v1199_v23 }
 0x3d7   : > { %v1227_v50 = vpop.trf.xlu1 }
 0x3d8   : > { %v1200_v60 = vpop.trf.xlu0  ;;  %v1263_v11 = vadd.f32 %v1262_v6, %v1227_v50 }
 0x3d9   : > { %v1247_v10 = vadd.f32 %v1246_v3, %v1200_v60 }
 0x3db   : > { %v1228_v1 = vpop.trf.xlu1 }
 0x3dc   : > { %v1201_v12 = vpop.trf.xlu0  ;;  %v1264_v49 = vadd.f32 %v1263_v11, %v1228_v1 }
 0x3dd   : > { %v1248_v15 = vadd.f32 %v1247_v10, %v1201_v12 }
 0x3df   : > { %v1229_v0 = vpop.trf.xlu1  ;;  %v1249_v14 = vrot.slane %v1248_v15, 4 }
 0x3e0   : > { %v1265_v25 = vadd.f32 %v1264_v49, %v1229_v0 }
 0x3e1   : > { %v1250_v57 = vadd.f32 %v1249_v14, %v1248_v15 }
 0x3e3   : > { %v1230_v19 = vpop.trf.xlu1  ;;  %v1251_v43 = vrot.slane %v1250_v57, 2 }
 0x3e4   : > { %v1266_v18 = vadd.f32 %v1265_v25, %v1230_v19 }
 0x3e5   : > { %v1252_v46 = vadd.f32 %v1251_v43, %v1250_v57 }
 0x3e7   : > { %v1231_v63 = vpop.trf.xlu1  ;;  %v1253_v40 = vrot.slane %v1252_v46, 1 }
 0x3e8   : > { %v1267_v35 = vadd.f32 %v1266_v18, %v1231_v63 }
 0x3e9   : > { %v1254_v29 = vadd.f32 %v1253_v40, %v1252_v46 }
 0x3eb   : > { %v1232_v30 = vpop.trf.xlu1 }
 0x3ec   : > { %v1268_v62 = vadd.f32 %v1267_v35, %v1232_v30 }
 0x3ef   : > { %v1233_v8 = vpop.trf.xlu1 }
 0x3f0   : > { %v1269_v21 = vadd.f32 %v1268_v62, %v1233_v8 }
 0x3f2   : > { %v1270_v7 = vrot.slane %v1269_v21, 4 }
 0x3f4   : > { %v1271_v48 = vadd.f32 %v1270_v7, %v1269_v21 }
 0x3f6   : > { %v1272_v34 = vrot.slane %v1271_v48, 2 }
 0x3f8   : > { %v1273_v27 = vadd.f32 %v1272_v34, %v1271_v48 }
 0x3fa   : > { %v1274_v4 = vrot.slane %v1273_v27, 1 }
 0x3fc   : > { %v1275_v31 = vadd.f32 %v1274_v4, %v1273_v27 }
 0x3fe   : > { %v1278_v20 = vcombine.low %v1254_v29, %v1275_v31 }
 0x400   : > { %v1285_v44 = vrot.slane %v1278_v20, %v1284_v51 }
 0x402   : > { %v1292_v38 = vrot.slane %v1285_v44, %v1284_v51 }
 0x404   : > { %1298 = vst.msk [vmem:[%s191_s20] sm:$0x3] %vm1296_vm1, %v1292_v38 }
 0x405   : > { %1775 = shalt.err (!%p1772_p3)
}
 0x406   : > { %s1776_s29 = scalar_lea.hbm %s2338_s28, 32  ;;  %s1780_s11 = scalar_lea.hbm %s2384_s4, 64 }
 0x407   : > { %p1777_p4 = scmp.ne.s32.totalorder %s2338_s28, %s1776_s29  ;;  %p1781_p9 = scmp.lt.u32.totalorder %s2338_s28, %s2384_s4 }
 0x408   : > { %p1782_p10 = scmp.lt.u32.totalorder %s1780_s11, %s1776_s29  ;;  %p1784_p12 = scmp.lt.u32.totalorder %s1776_s29, %s2338_s28 }
 0x409   : > { %p1778_p7 = pnand %p1777_p4, %p1888_p5 }
 0x40a   : > { %p1783_p11 = por %p1782_p10, %p1781_p9 }
 0x40b   : > { %p1779_p8 = pneg %p1778_p7 }
 0x40c   : > { %p1785_p13 = por %p1784_p12, %p1783_p11 }
 0x40e   : > { %p1786_p0 = pnand %p1785_p13, %p1779_p8 }
 0x410   : > { %1789 = shalt.err (!%p1786_p0)
}
 0x411   : > { %1569 = dma.vmem_to_hbm [thread:$0]  (%p1888_p5), %s2340_s22, 32, %s2338_s28, %s1300_s30  }
 0x412 PF: > { %p1575_p1 = scmp.ge.s32.totalorder %s1824_s18, 2  ;;  %s1326_s14 = sand.u32 1, %s1812_s15  }
 0x413   : > { %s1327_s19 = scalar_lea.sflag [#allocation3], %s1326_s14 }
 0x414   : > { %p1572_p2 = pnand %p1575_p1, %p1892_p6 }
 0x416   : > { %1807 = dma.done.wait (!%p1572_p2), %s1327_s19, 32  }
 0x417   : > { %1809 = vsyncadd (!%p1572_p2), %s1327_s19, 4294967264  ;;  %p14_p3 = scmp.ge.s32.totalorder %s1876_s21, 4   ;;  %s2387_s15 = smov %s1816_s16 }
 0x418   : > { %s2388_s16 = smov %s1820_s17  ;;  %s2389_s17 = smov %s1886_s24 }
 0x419   : > { %s2390_s18 = smov %s1876_s21  ;;  %16 = sbr.rel (!%p14_p3) target bundleno = 3 (0x3), region = 71 }
 0x420   :  { %1332 = vsyncpa [#allocation3], 1 }
 0x421   :  { %1334 = vsyncpa [#allocation3 + $0x1], 1 }

</bundles_post_ra>
